<compile_context>
chip_gen: v7x
topology: tpu7x:2x2x1
jax: 0.10.0
libtpu: 0.0.40
codegen_flags: <defaults>
</compile_context>

<pallas_src>
import functools

import jax
import jax.numpy as jnp
from jax.experimental import pallas as pl
from jax.experimental.pallas import tpu as pltpu

MIN_STD = 1e-20
MAX_STD = 100.0
HIDDEN = 256


def actor_net_kernel(s_ref, w1_ref, b1_ref, w2_ref, b2_ref, wh_ref, bh_ref,
                     out_ref, *, a_dim):
    # MXU inputs in bf16, accumulation + elementwise in f32.
    x = s_ref[...].astype(jnp.bfloat16)

    # x = relu(l1(s))
    h1 = jnp.dot(x, w1_ref[...], preferred_element_type=jnp.float32) + b1_ref[...]
    h1 = jnp.maximum(h1, 0.0).astype(jnp.bfloat16)

    # x = relu(l2(x))
    h2 = jnp.dot(h1, w2_ref[...], preferred_element_type=jnp.float32) + b2_ref[...]
    h2 = jnp.maximum(h2, 0.0).astype(jnp.bfloat16)

    # Fused heads: y[:, :a_dim] = l_mean(x), y[:, a_dim:] = l_logstd(x)
    y = jnp.dot(h2, wh_ref[...], preferred_element_type=jnp.float32) + bh_ref[...]

    # std = clamp(exp(log_std), min_std, max_std)  (abs is redundant: exp >= 0)
    # Lane-mask select instead of sub-128-lane slice + concat: mean lanes pass
    # through, std lanes get exp+clip.  exp on the mean lanes is free EUP work
    # and gets discarded by the where.
    std_all = jnp.clip(jnp.exp(y), MIN_STD, MAX_STD)
    cols = jax.lax.broadcasted_iota(jnp.int32, y.shape, 1)
    out_ref[...] = jnp.where(cols < a_dim, y, std_all)


def _choose_block_m(batch):
    # Big lane-dense batch tiles when possible (85%+ of HBM roofline at
    # 512-1024 per measured Pallas data); fall back to a single full block.
    for tm in (1024, 512, 256, 128):
        if batch % tm == 0:
            return tm
    return batch


def actor_net_forward(s, params):
    """s: (B, s_dim) float32 -> (m, std), each (B, a_dim) float32."""
    w1, b1, w2, b2, wh, bh = params
    B, s_dim = s.shape
    hidden = w1.shape[1]
    two_a = wh.shape[1]
    a_dim = two_a // 2

    tm = _choose_block_m(B)
    grid = (B // tm,)

    kernel = functools.partial(actor_net_kernel, a_dim=a_dim)

    out = pl.pallas_call(
        kernel,
        out_shape=jax.ShapeDtypeStruct((B, two_a), jnp.float32),
        grid_spec=pltpu.PrefetchScalarGridSpec(
            num_scalar_prefetch=0,
            grid=grid,
            in_specs=[
                # state: tiled over batch (double-buffered by BlockSpec)
                pl.BlockSpec((tm, s_dim), lambda i: (i, 0)),
                # weights/biases: full blocks, resident across grid steps
                pl.BlockSpec((s_dim, hidden), lambda i: (0, 0)),
                pl.BlockSpec((1, hidden), lambda i: (0, 0)),
                pl.BlockSpec((hidden, hidden), lambda i: (0, 0)),
                pl.BlockSpec((1, hidden), lambda i: (0, 0)),
                pl.BlockSpec((hidden, two_a), lambda i: (0, 0)),
                pl.BlockSpec((1, two_a), lambda i: (0, 0)),
            ],
            out_specs=pl.BlockSpec((tm, two_a), lambda i: (i, 0)),
        ),
        compiler_params=pltpu.CompilerParams(
            dimension_semantics=("parallel",)),
    )(s, w1, b1, w2, b2, wh, bh)

    # Free wrapper-side split of the lane-contiguous slab.
    m = out[:, :a_dim]
    std = out[:, a_dim:]
    return m, std


def init_params(key, s_dim, a_dim, hidden=HIDDEN):
    """Deterministic synthetic init (stand-in for weights_init_rnd).

    Weights stored as (in_features, out_features) in bf16 (MXU input dtype);
    biases as (1, out) in f32 (added post f32 accumulation).  The two head
    layers are concatenated into a single (hidden, 2*a_dim) weight."""
    keys = jax.random.split(key, 8)

    def lin(kw, kb, fan_in, fan_out):
        bound = 1.0 / jnp.sqrt(fan_in)
        w = jax.random.uniform(kw, (fan_in, fan_out), jnp.float32, -bound, bound)
        b = jax.random.uniform(kb, (1, fan_out), jnp.float32, -bound, bound)
        return w.astype(jnp.bfloat16), b

    w1, b1 = lin(keys[0], keys[1], s_dim, hidden)
    w2, b2 = lin(keys[2], keys[3], hidden, hidden)
    wm, bm = lin(keys[4], keys[5], hidden, a_dim)
    wls, bls = lin(keys[6], keys[7], hidden, a_dim)
    # Fuse the two heads: zero runtime cost, halves head matmul count.
    wh = jnp.concatenate([wm, wls], axis=1)
    bh = jnp.concatenate([bm, bls], axis=1)
    return (w1, b1, w2, b2, wh, bh)


def reference_forward(s, params):
    """Pure-JAX reference with the same dtypes (bf16 matmul, f32 accumulate)."""
    w1, b1, w2, b2, wh, bh = params
    a_dim = wh.shape[1] // 2
    x = s.astype(jnp.bfloat16)
    h1 = jnp.maximum(
        jnp.dot(x, w1, preferred_element_type=jnp.float32) + b1, 0.0
    ).astype(jnp.bfloat16)
    h2 = jnp.maximum(
        jnp.dot(h1, w2, preferred_element_type=jnp.float32) + b2, 0.0
    ).astype(jnp.bfloat16)
    y = jnp.dot(h2, wh, preferred_element_type=jnp.float32) + bh
    m = y[:, :a_dim]
    std = jnp.clip(jnp.exp(y[:, a_dim:]), MIN_STD, MAX_STD)
    return m, std


if __name__ == "__main__":
    key = jax.random.PRNGKey(0)
    k_param, k_input = jax.random.split(key)

    B, S_DIM, A_DIM = 8, 16, 8
    params = init_params(k_param, S_DIM, A_DIM)
    s = jax.random.normal(k_input, (B, S_DIM), jnp.float32)

    m, std = actor_net_forward(s, params)
    jax.block_until_ready((m, std))

    m_ref, std_ref = reference_forward(s, params)
    assert m.shape == (B, A_DIM) and std.shape == (B, A_DIM)
    assert jnp.allclose(m, m_ref, atol=1e-2, rtol=1e-2)
    assert jnp.allclose(std, std_ref, atol=1e-2, rtol=1e-2)
    assert bool(jnp.all(std >= 0.0)) and bool(jnp.all(std <= MAX_STD))

    print("KERNEL_OK")
</pallas_src>

<mosaic_0001>
module attributes {stable_mosaic.version = 11 : i64} {
  func.func @actor_net_kernel(%arg0: i32, %arg1: memref<8x16xf32, #tpu.memory_space<vmem>>, %arg2: memref<16x256xbf16, #tpu.memory_space<vmem>>, %arg3: memref<1x256xf32, #tpu.memory_space<vmem>>, %arg4: memref<256x256xbf16, #tpu.memory_space<vmem>>, %arg5: memref<1x256xf32, #tpu.memory_space<vmem>>, %arg6: memref<256x16xbf16, #tpu.memory_space<vmem>>, %arg7: memref<1x16xf32, #tpu.memory_space<vmem>>, %arg8: memref<8x16xf32, #tpu.memory_space<vmem>>) attributes {dimension_semantics = [#tpu.dimension_semantics<parallel>], iteration_bounds = array<i64: 1>, scalar_prefetch = 0 : i64, scratch_operands = 0 : i64, tpu.core_type = #tpu.core_type<tc>, window_params = [{transform_indices = @transform_0, window_bounds = array<i64: 8, 16>}, {pipeline_mode = #tpu.pipeline_mode<synchronous>, transform_indices = @transform_1, window_bounds = array<i64: 16, 256>}, {pipeline_mode = #tpu.pipeline_mode<synchronous>, transform_indices = @transform_2, window_bounds = array<i64: 1, 256>}, {pipeline_mode = #tpu.pipeline_mode<synchronous>, transform_indices = @transform_3, window_bounds = array<i64: 256, 256>}, {pipeline_mode = #tpu.pipeline_mode<synchronous>, transform_indices = @transform_4, window_bounds = array<i64: 1, 256>}, {pipeline_mode = #tpu.pipeline_mode<synchronous>, transform_indices = @transform_5, window_bounds = array<i64: 256, 16>}, {pipeline_mode = #tpu.pipeline_mode<synchronous>, transform_indices = @transform_6, window_bounds = array<i64: 1, 16>}, {transform_indices = @transform_7, window_bounds = array<i64: 8, 16>}]} {
    %c0 = arith.constant 0 : index
    %c0_0 = arith.constant 0 : index
    %0 = vector.load %arg1[%c0, %c0_0] : memref<8x16xf32, #tpu.memory_space<vmem>>, vector<8x16xf32>
    %1 = arith.truncf %0 : vector<8x16xf32> to vector<8x16xbf16>
    %c0_1 = arith.constant 0 : index
    %c0_2 = arith.constant 0 : index
    %2 = vector.load %arg2[%c0_1, %c0_2] : memref<16x256xbf16, #tpu.memory_space<vmem>>, vector<16x256xbf16>
    %cst = arith.constant dense<0.000000e+00> : vector<8x256xf32>
    %3 = tpu.matmul %1, %2, %cst {dimension_numbers = #tpu.dot_dimension_numbers<[1], [0], [0], [1], [0, 0, 1, 1], [], []>} : vector<8x16xbf16>, vector<16x256xbf16>, vector<8x256xf32> -> vector<8x256xf32>
    %c0_3 = arith.constant 0 : index
    %c0_4 = arith.constant 0 : index
    %4 = vector.load %arg3[%c0_3, %c0_4] : memref<1x256xf32, #tpu.memory_space<vmem>>, vector<1x256xf32>
    %5 = vector.broadcast %4 : vector<1x256xf32> to vector<8x256xf32>
    %6 = arith.addf %3, %5 : vector<8x256xf32>
    %cst_5 = arith.constant 0.000000e+00 : f32
    %7 = vector.broadcast %cst_5 : f32 to vector<8x256xf32>
    %8 = arith.maximumf %6, %7 : vector<8x256xf32>
    %9 = arith.truncf %8 : vector<8x256xf32> to vector<8x256xbf16>
    %c0_6 = arith.constant 0 : index
    %c0_7 = arith.constant 0 : index
    %10 = vector.load %arg4[%c0_6, %c0_7] : memref<256x256xbf16, #tpu.memory_space<vmem>>, vector<256x256xbf16>
    %cst_8 = arith.constant dense<0.000000e+00> : vector<8x256xf32>
    %11 = tpu.matmul %9, %10, %cst_8 {dimension_numbers = #tpu.dot_dimension_numbers<[1], [0], [0], [1], [0, 0, 1, 1], [], []>} : vector<8x256xbf16>, vector<256x256xbf16>, vector<8x256xf32> -> vector<8x256xf32>
    %c0_9 = arith.constant 0 : index
    %c0_10 = arith.constant 0 : index
    %12 = vector.load %arg5[%c0_9, %c0_10] : memref<1x256xf32, #tpu.memory_space<vmem>>, vector<1x256xf32>
    %13 = vector.broadcast %12 : vector<1x256xf32> to vector<8x256xf32>
    %14 = arith.addf %11, %13 : vector<8x256xf32>
    %cst_11 = arith.constant 0.000000e+00 : f32
    %15 = vector.broadcast %cst_11 : f32 to vector<8x256xf32>
    %16 = arith.maximumf %14, %15 : vector<8x256xf32>
    %17 = arith.truncf %16 : vector<8x256xf32> to vector<8x256xbf16>
    %c0_12 = arith.constant 0 : index
    %c0_13 = arith.constant 0 : index
    %18 = vector.load %arg6[%c0_12, %c0_13] : memref<256x16xbf16, #tpu.memory_space<vmem>>, vector<256x16xbf16>
    %cst_14 = arith.constant dense<0.000000e+00> : vector<8x16xf32>
    %19 = tpu.matmul %17, %18, %cst_14 {dimension_numbers = #tpu.dot_dimension_numbers<[1], [0], [0], [1], [0, 0, 1, 1], [], []>} : vector<8x256xbf16>, vector<256x16xbf16>, vector<8x16xf32> -> vector<8x16xf32>
    %c0_15 = arith.constant 0 : index
    %c0_16 = arith.constant 0 : index
    %20 = vector.load %arg7[%c0_15, %c0_16] : memref<1x16xf32, #tpu.memory_space<vmem>>, vector<1x16xf32>
    %21 = vector.broadcast %20 : vector<1x16xf32> to vector<8x16xf32>
    %22 = arith.addf %19, %21 : vector<8x16xf32>
    %23 = math.exp %22 : vector<8x16xf32>
    %cst_17 = arith.constant 9.99999968E-21 : f32
    %cst_18 = arith.constant 1.000000e+02 : f32
    %24 = vector.broadcast %cst_17 : f32 to vector<8x16xf32>
    %25 = arith.maximumf %24, %23 : vector<8x16xf32>
    %26 = vector.broadcast %cst_18 : f32 to vector<8x16xf32>
    %27 = arith.minimumf %26, %25 : vector<8x16xf32>
    %28 = tpu.iota {dimensions = array<i32: 1>} : vector<8x16xi32>
    %c8_i32 = arith.constant 8 : i32
    %29 = vector.broadcast %c8_i32 : i32 to vector<8x16xi32>
    %30 = arith.cmpi slt, %28, %29 : vector<8x16xi32>
    %31 = arith.select %30, %22, %27 : vector<8x16xi1>, vector<8x16xf32>
    %c0_19 = arith.constant 0 : index
    %c0_20 = arith.constant 0 : index
    %32 = vector.load %arg8[%c0_19, %c0_20] : memref<8x16xf32, #tpu.memory_space<vmem>>, vector<8x16xf32>
    tpu.vector_store %arg8[%c0_19, %c0_20], %31 {strides = array<i32>} : memref<8x16xf32, #tpu.memory_space<vmem>>, vector<8x16xf32>,
    return
  }
  func.func @transform_0(%arg0: i32) -> (i32, i32) {
    %c0_i32 = arith.constant 0 : i32
    %c0_i32_0 = arith.constant 0 : i32
    return %arg0, %c0_i32 : i32, i32
  }
  func.func @transform_1(%arg0: i32) -> (i32, i32) {
    %c0_i32 = arith.constant 0 : i32
    %c0_i32_0 = arith.constant 0 : i32
    %c0_i32_1 = arith.constant 0 : i32
    return %c0_i32, %c0_i32_0 : i32, i32
  }
  func.func @transform_2(%arg0: i32) -> (i32, i32) {
    %c0_i32 = arith.constant 0 : i32
    %c0_i32_0 = arith.constant 0 : i32
    %c0_i32_1 = arith.constant 0 : i32
    return %c0_i32, %c0_i32_0 : i32, i32
  }
  func.func @transform_3(%arg0: i32) -> (i32, i32) {
    %c0_i32 = arith.constant 0 : i32
    %c0_i32_0 = arith.constant 0 : i32
    %c0_i32_1 = arith.constant 0 : i32
    return %c0_i32, %c0_i32_0 : i32, i32
  }
  func.func @transform_4(%arg0: i32) -> (i32, i32) {
    %c0_i32 = arith.constant 0 : i32
    %c0_i32_0 = arith.constant 0 : i32
    %c0_i32_1 = arith.constant 0 : i32
    return %c0_i32, %c0_i32_0 : i32, i32
  }
  func.func @transform_5(%arg0: i32) -> (i32, i32) {
    %c0_i32 = arith.constant 0 : i32
    %c0_i32_0 = arith.constant 0 : i32
    %c0_i32_1 = arith.constant 0 : i32
    return %c0_i32, %c0_i32_0 : i32, i32
  }
  func.func @transform_6(%arg0: i32) -> (i32, i32) {
    %c0_i32 = arith.constant 0 : i32
    %c0_i32_0 = arith.constant 0 : i32
    %c0_i32_1 = arith.constant 0 : i32
    return %c0_i32, %c0_i32_0 : i32, i32
  }
  func.func @transform_7(%arg0: i32) -> (i32, i32) {
    %c0_i32 = arith.constant 0 : i32
    %c0_i32_0 = arith.constant 0 : i32
    return %arg0, %c0_i32 : i32, i32
  }
}

</mosaic_0001>

<bundles_post_ra>
// kernel: tpu_custom_call.1
= control target key start
LH: loop header
LB: loop body
LE: loop exit
PB: predicated region body
PF: predicated region fallthrough
CT: control target
= control target key end

     0   :  { %12 = vsyncpa [#allocation3], 0  ;;  %s898_s0 = inlined_call_operand.vmem [shape: f32[8,16], index: 0, kind: input, shape index: {}]   ;;  %s899_s1 = inlined_call_operand.vmem [shape: bf16[16,256], index: 1, kind: input, shape index: {}]   ;;  %s900_s2 = inlined_call_operand.vmem [shape: f32[1,256], index: 2, kind: input, shape index: {}]   ;;  %s901_s3 = inlined_call_operand.hbm [shape: bf16[256,256], index: 3, kind: input, shape index: {}]   ;;  %s902_s4 = inlined_call_operand.vmem [shape: f32[1,256], index: 4, kind: input, shape index: {}]   ;;  %s903_s5 = inlined_call_operand.vmem [shape: bf16[256,16], index: 5, kind: input, shape index: {}]   ;;  %s904_s6 = inlined_call_operand.vmem [shape: f32[1,16], index: 6, kind: input, shape index: {}]   ;;  %s905_s7 = inlined_call_operand.hbm [shape: f32[8,16], index: 7, kind: output, shape index: {}]  }
   0x1   :  { %13 = vsyncpa [#allocation4], 0  ;;  %s761_s24 = smov [#allocation2]   ;;  %s713_s28 = scalar_lea.hbm %s901_s3, 4096 }
   0x2   :  { %s25_s25 = sshll.u32 %s761_s24, 4  ;;  %p714_p0 = scmp.ne.s32.totalorder %s901_s3, %s713_s28  ;;  %s26_s25 = int_to_ptr.vmem [resolvable:$true] %s25_s25 }
   0x3   :  { %p717_p1 = scmp.lt.u32.totalorder %s713_s28, %s901_s3 }
   0x5   :  { %p719_p2 = pnand %p717_p1, %p714_p0 }
   0x7   :  { %722 = shalt.err (!%p719_p2)
}
   0x8   :  { %s723_s10 = scalar_lea.vmem %s26_s25, 4096  ;;  %p728_p4 = scmp.lt.s32.totalorder %s26_s25, %s26_s25 }
   0x9   :  { %p724_p3 = scmp.ne.s32.totalorder %s26_s25, %s723_s10  ;;  %p729_p5 = scmp.lt.s32.totalorder %s723_s10, %s723_s10 }
   0xb   :  { %p730_p6 = por %p729_p5, %p728_p4 }
   0xd   :  { %p731_p7 = pnand %p730_p6, %p724_p3 }
   0xf   :  { %734 = shalt.err (!%p731_p7)
}
  0x10   :  { %s762_s11 = smov 128   ;;  %s763_s12 = smov 8  }
  0x11   :  { %31 = dma.hbm_to_vmem [thread:$0]  %s901_s3, 4096, %s26_s25, [#allocation3], %s762_s11, %s762_s11, %s763_s12  }
  0x12   :  { %757 = dma.done.wait [#allocation3], 4096  }
  0x13   :  { %758 = vsyncadd [#allocation3], 4294963200  ;;  %v764_v0 = vmov 0   ;;  %v644_v1 = vld [vmem:[%s899_s1 + $0x4] ss:$8 sps:$4 sm:$0xff]   ;;  %vm68_vm0 = vcmask 130048   ;;  %v48_v49 = vlaneseq }
  0x14   :  { %104 = vmatprep.mubr.bf16.mxu0 %v764_v0  ;;  %v646_v2 = vld [vmem:[%s899_s1] ss:$8 sps:$4 sm:$0xff]   ;;  %72 = vmatprep.subr.bf16.mxu0 %v644_v1  ;;  %v647_v5 = vld [vmem:[#allocation2 + $0x4] ss:$8 sps:$4 sm:$0xff]   ;;  %v650_v7 = vld [vmem:[#allocation2 + $0x14] ss:$8 sps:$4 sm:$0xff]  }
  0x15   :  { %v42_v3 = vld [vmem:[%s898_s0] sm:$0xff]  ;;  %73 = vmatpush1.bf16.msra.mxu0 %v646_v2  ;;  %321 = vmatprep.subr.bf16.mxu1 %v647_v5  ;;  %v652_v8 = vld [vmem:[#allocation2 + $0x10] ss:$8 sps:$4 sm:$0xff]   ;;  %v656_v11 = vld [vmem:[#allocation2 + $0x34] ss:$8 sps:$4 sm:$0xff]   ;;  %v49_v50 = vshrl.u32 %v48_v49, 7 }
  0x16   :  { %v43_v4 = vpack.c.bf16 %v42_v3, %v42_v3  ;;  %v649_v6 = vld [vmem:[#allocation2] ss:$8 sps:$4 sm:$0xff]   ;;  %v653_v9 = vld [vmem:[#allocation2 + $0x24] ss:$8 sps:$4 sm:$0xff]   ;;  %v658_v12 = vld [vmem:[#allocation2 + $0x30] ss:$8 sps:$4 sm:$0xff]  }
  0x17   :  { %322 = vmatpush1.bf16.msra.mxu1 %v649_v6  ;;  %v655_v10 = vld [vmem:[#allocation2 + $0x20] ss:$8 sps:$4 sm:$0xff]   ;;  %v659_v13 = vld [vmem:[#allocation2 + $0x44] ss:$8 sps:$4 sm:$0xff]   ;;  %v662_v15 = vld [vmem:[#allocation2 + $0x54] ss:$8 sps:$4 sm:$0xff]  }
  0x18   :  { %567 = vmatmul.mubr.msk.bf16.vlgmr.msra.gmra.mrb[0].mxu0 %vm68_vm0, %v43_v4  ;;  %323 = vmatprep.subr.bf16.mxu1 %v650_v7  ;;  %v661_v14 = vld [vmem:[#allocation2 + $0x40] ss:$8 sps:$4 sm:$0xff]   ;;  %v664_v16 = vld [vmem:[#allocation2 + $0x50] ss:$8 sps:$4 sm:$0xff]   ;;  %v665_v17 = vld [vmem:[#allocation2 + $0x64] ss:$8 sps:$4 sm:$0xff]  }
  0x19   :  { %v667_v18 = vld [vmem:[#allocation2 + $0x60] ss:$8 sps:$4 sm:$0xff]   ;;  %v668_v19 = vld [vmem:[#allocation2 + $0x74] ss:$8 sps:$4 sm:$0xff]   ;;  %v670_v20 = vld [vmem:[#allocation2 + $0x70] ss:$8 sps:$4 sm:$0xff]  }
  0x1a   :  { %v671_v21 = vld [vmem:[#allocation2 + $0x84] ss:$8 sps:$4 sm:$0xff]   ;;  %v673_v22 = vld [vmem:[#allocation2 + $0x80] ss:$8 sps:$4 sm:$0xff]   ;;  %v674_v23 = vld [vmem:[#allocation2 + $0x94] ss:$8 sps:$4 sm:$0xff]  }
  0x1b   :  { %324 = vmatpush1.bf16.msra.mxu1 %v652_v8  ;;  %v676_v24 = vld [vmem:[#allocation2 + $0x90] ss:$8 sps:$4 sm:$0xff]   ;;  %v677_v25 = vld [vmem:[#allocation2 + $0xa4] ss:$8 sps:$4 sm:$0xff]   ;;  %v679_v26 = vld [vmem:[#allocation2 + $0xa0] ss:$8 sps:$4 sm:$0xff]  }
  0x1c   :  { %325 = vmatprep.subr.bf16.mxu1 %v653_v9  ;;  %v680_v27 = vld [vmem:[#allocation2 + $0xb4] ss:$8 sps:$4 sm:$0xff]   ;;  %v682_v28 = vld [vmem:[#allocation2 + $0xb0] ss:$8 sps:$4 sm:$0xff]   ;;  %v683_v29 = vld [vmem:[#allocation2 + $0xc4] ss:$8 sps:$4 sm:$0xff]  }
  0x1d   :  { %v685_v30 = vld [vmem:[#allocation2 + $0xc0] ss:$8 sps:$4 sm:$0xff]   ;;  %v686_v31 = vld [vmem:[#allocation2 + $0xd4] ss:$8 sps:$4 sm:$0xff]   ;;  %v688_v32 = vld [vmem:[#allocation2 + $0xd0] ss:$8 sps:$4 sm:$0xff]  }
  0x1e   :  { %v689_v33 = vld [vmem:[#allocation2 + $0xe4] ss:$8 sps:$4 sm:$0xff]   ;;  %v691_v34 = vld [vmem:[#allocation2 + $0xe0] ss:$8 sps:$4 sm:$0xff]   ;;  %v692_v35 = vld [vmem:[#allocation2 + $0xf4] ss:$8 sps:$4 sm:$0xff]  }
  0x1f   :  { %326 = vmatpush1.bf16.msra.mxu1 %v655_v10  ;;  %v694_v36 = vld [vmem:[#allocation2 + $0xf0] ss:$8 sps:$4 sm:$0xff]   ;;  %v695_v37 = vld [vmem:[%s903_s5 + $0x40] sm:$0xff]   ;;  %v697_v39 = vld [vmem:[%s903_s5 + $0x48] sm:$0xff]   ;;  %v50_v51 = vsub.s32 0, %v49_v50  ;;  %v54_v53 = vsub.s32 1, %v49_v50 }
  0x20   :  { %327 = vmatprep.subr.bf16.mxu1 %v656_v11  ;;  %v696_v38 = vld [vmem:[%s903_s5] sm:$0xff]   ;;  %617 = vmatprep.subr.bf16.mxu0 %v695_v37  ;;  %v698_v40 = vld [vmem:[%s903_s5 + $0x8] sm:$0xff]   ;;  %v699_v41 = vld [vmem:[%s903_s5 + $0x50] sm:$0xff]  }
  0x21   :  { %618 = vmatpush3.bf16.msra.mxu0 %v696_v38  ;;  %v700_v42 = vld [vmem:[%s903_s5 + $0x10] sm:$0xff]   ;;  %v701_v43 = vld [vmem:[%s903_s5 + $0x58] sm:$0xff]   ;;  %v703_v45 = vld [vmem:[%s903_s5 + $0x60] sm:$0xff]  }
  0x22   :  { %619 = vmatprep.subr.bf16.mxu0 %v697_v39  ;;  %v702_v44 = vld [vmem:[%s903_s5 + $0x18] sm:$0xff]   ;;  %v704_v46 = vld [vmem:[%s903_s5 + $0x20] sm:$0xff]   ;;  %v705_v47 = vld [vmem:[%s903_s5 + $0x68] sm:$0xff]  }
  0x23   :  { %328 = vmatpush1.bf16.msra.mxu1 %v658_v12  ;;  %v706_v48 = vld [vmem:[%s903_s5 + $0x28] sm:$0xff]   ;;  %v46_v52 = vld [vmem:[%s900_s2] sm:$0x3]  ;;  %v707_v2 = vld [vmem:[%s903_s5 + $0x70] sm:$0xff]  }
  0x24   :  { %329 = vmatprep.subr.bf16.mxu1 %v659_v13  ;;  %v51_v54 = vrot.slane %v46_v52, %v50_v51  ;;  %v55_v55 = vrot.slane %v46_v52, %v54_v53  ;;  %v708_v3 = vld [vmem:[%s903_s5 + $0x30] sm:$0xff]   ;;  %v709_v4 = vld [vmem:[%s903_s5 + $0x78] sm:$0xff]   ;;  %v149_v6 = vld [vmem:[%s902_s4] sm:$0x3]  ;;  %s765_s4 = smov [#allocation5]  }
  0x25   :  { %620 = vmatpush3.bf16.msra.mxu0 %v698_v40  ;;  %v710_v5 = vld [vmem:[%s903_s5 + $0x38] sm:$0xff]   ;;  %v154_v7 = vrot.slane %v149_v6, %v50_v51  ;;  %v158_v8 = vrot.slane %v149_v6, %v54_v53  ;;  %s556_s28 = sshll.u32 %s765_s4, 4  ;;  %s557_s28 = int_to_ptr.vmem [resolvable:$true] %s556_s28 }
  0x26   :  { %621 = vmatprep.subr.bf16.mxu0 %v699_v41  ;;  %s735_s29 = scalar_lea.vmem %s557_s28, 128  ;;  %p740_p9 = scmp.lt.s32.totalorder %s557_s28, %s557_s28 }
  0x27   :  { %330 = vmatpush1.bf16.msra.mxu1 %v661_v14  ;;  %p736_p8 = scmp.ne.s32.totalorder %s557_s28, %s735_s29  ;;  %p741_p10 = scmp.lt.s32.totalorder %s735_s29, %s735_s29 }
  0x28   :  { %331 = vmatprep.subr.bf16.mxu1 %v662_v15 }
  0x29   :  { %622 = vmatpush3.bf16.msra.mxu0 %v700_v42  ;;  %p742_p11 = por %p741_p10, %p740_p9 }
  0x2a   :  { %623 = vmatprep.subr.bf16.mxu0 %v701_v43 }
  0x2b   :  { %332 = vmatpush1.bf16.msra.mxu1 %v664_v16  ;;  %p743_p12 = pnand %p742_p11, %p736_p8 }
  0x2c   :  { %333 = vmatprep.subr.bf16.mxu1 %v665_v17 }
  0x2d   :  { %624 = vmatpush3.bf16.msra.mxu0 %v702_v44 }
  0x2e   :  { %625 = vmatprep.subr.bf16.mxu0 %v703_v45 }
  0x2f   :  { %334 = vmatpush1.bf16.msra.mxu1 %v667_v18 }
  0x30   :  { %335 = vmatprep.subr.bf16.mxu1 %v668_v19 }
  0x31   :  { %626 = vmatpush3.bf16.msra.mxu0 %v704_v46 }
  0x32   :  { %627 = vmatprep.subr.bf16.mxu0 %v705_v47 }
  0x33   :  { %336 = vmatpush1.bf16.msra.mxu1 %v670_v20  ;;  %v600_v20 = vld [vmem:[%s904_s6] ss:$0 sm:$0xff] }
  0x34   :  { %337 = vmatprep.subr.bf16.mxu1 %v671_v21 }
  0x35   :  { %628 = vmatpush3.bf16.msra.mxu0 %v706_v48 }
  0x36   :  { %629 = vmatprep.subr.bf16.mxu0 %v707_v2 }
  0x37   :  { %338 = vmatpush1.bf16.msra.mxu1 %v673_v22 }
  0x38   :  { %339 = vmatprep.subr.bf16.mxu1 %v674_v23 }
  0x39   :  { %630 = vmatpush3.bf16.msra.mxu0 %v708_v3 }
  0x3a   :  { %631 = vmatprep.subr.bf16.mxu0 %v709_v4 }
  0x3b   :  { %340 = vmatpush1.bf16.msra.mxu1 %v676_v24 }
  0x3c   :  { %341 = vmatprep.subr.bf16.mxu1 %v677_v25 }
  0x3d   :  { %632 = vmatpush3.bf16.msra.mxu0 %v710_v5 }
  0x3f   :  { %342 = vmatpush1.bf16.msra.mxu1 %v679_v26 }
  0x40   :  { %343 = vmatprep.subr.bf16.mxu1 %v680_v27  ;;  %v546_v27 = vand.u32 127, %v48_v49 }
  0x42   :  { %vm547_vm1 = vcmp.lt.s32.totalorder %v546_v27, 8 }
  0x43   :  { %344 = vmatpush1.bf16.msra.mxu1 %v682_v28 }
  0x44   :  { %345 = vmatprep.subr.bf16.mxu1 %v683_v29 }
  0x47   :  { %346 = vmatpush1.bf16.msra.mxu1 %v685_v30 }
  0x48   :  { %347 = vmatprep.subr.bf16.mxu1 %v686_v31 }
  0x4b   :  { %348 = vmatpush1.bf16.msra.mxu1 %v688_v32 }
  0x4c   :  { %349 = vmatprep.subr.bf16.mxu1 %v689_v33 }
  0x4f   :  { %350 = vmatpush1.bf16.msra.mxu1 %v691_v34 }
  0x50   :  { %351 = vmatprep.subr.bf16.mxu1 %v692_v35 }
  0x53   :  { %352 = vmatpush1.bf16.msra.mxu1 %v694_v36 }
  0xeb   :  { %v106_v56 = vpop.f32.mrb[0].mxu0 }
  0xec   :  { %v107_v57 = vadd.f32 %v106_v56, %v51_v54  ;;  %v108_v58 = vpop.f32.mrb[1].mxu0 }
  0xed   :  { %v109_v59 = vadd.f32 %v108_v58, %v55_v55  ;;  %v110_v60 = vpop.f32.mrb[2].mxu0 }
  0xee   :  { %v113_v61 = vmax.f32 %v107_v57, 0.0  ;;  %v111_v62 = vpop.f32.mrb[3].mxu0 }
  0xef   :  { %v114_v63 = vmax.f32 %v109_v59, 0.0 }
  0xf0   :  { %v115_v1 = vpack.c.bf16 %v113_v61, %v113_v61 }
  0xf1   :  { %v116_v0 = vpack.c.bf16 %v114_v63, %v114_v63 }
  0xf3   :  { %353 = vmatprep.mubr.bf16.mxu1 %v116_v0 }
  0xf4   :  { %354 = vmatmul.mubr.bf16.vlgmr.msra.gmra.mrb[0].mxu1 %v115_v1 }
 0x1c7   :  { %v355_v9 = vpop.f32.mrb[0].mxu1 }
 0x1c8   :  { %v356_v10 = vadd.f32 %v355_v9, %v154_v7  ;;  %v357_v11 = vpop.f32.mrb[1].mxu1 }
 0x1c9   :  { %v358_v12 = vadd.f32 %v357_v11, %v158_v8  ;;  %v359_v13 = vpop.f32.mrb[2].mxu1 }
 0x1ca   :  { %v362_v14 = vmax.f32 %v356_v10, 0.0  ;;  %v360_v15 = vpop.f32.mrb[3].mxu1 }
 0x1cb   :  { %v363_v16 = vmax.f32 %v358_v12, 0.0 }
 0x1cc   :  { %v364_v18 = vpack.c.bf16 %v362_v14, %v362_v14 }
 0x1cd   :  { %v365_v17 = vpack.c.bf16 %v363_v16, %v363_v16 }
 0x1cf   :  { %533 = vmatprep.mubr.bf16.mxu0 %v365_v17 }
 0x1d0   :  { %534 = vmatmul.mubr.bf16.vlgmr.msra.gmra.mrb[4].mxu0 %v364_v18 }
 0x2a3   :  { %v633_v19 = vpop.f32.mrb[4].mxu0 }
 0x2a4   :  { %v634_v21 = vpop.f32.mrb[5].mxu0 }
 0x2a5   :  { %v635_v22 = vadd.f32 %v634_v21, %v633_v19  ;;  %v636_v23 = vpop.f32.mrb[6].mxu0 }
 0x2a6   :  { %v637_v24 = vpop.f32.mrb[7].mxu0 }
 0x2a7   :  { %v536_v25 = vadd.f32 %v635_v22, %v600_v20 }
 0x2a9   :  { %v541_v26 = vmul.f32 1.442695, %v536_v25 }
 0x2ab   :  { %711 = vpow2.f32 %v541_v26 }
 0x2b5   :  { %v712_v28 = vpop.eup %711 }
 0x2b6   :  { %v543_v29 = vmax.f32 %v712_v28, 1e-20 }
 0x2b8   :  { %v544_v30 = vmin.f32 %v543_v29, 100.0 }
 0x2ba   :  { %v548_v31 = vsel %vm547_vm1, %v536_v25, %v544_v30 }
 0x2bb   :  { %549 = vst.msk [vmem:[#allocation5] sm:$0xff] %vm68_vm0, %v548_v31 }
 0x2bc   :  { %746 = shalt.err (!%p743_p12)
}
 0x2bd   :  { %s747_s8 = scalar_lea.hbm %s905_s7, 128 }
 0x2be   :  { %p748_p13 = scmp.ne.s32.totalorder %s905_s7, %s747_s8  ;;  %p751_p0 = scmp.lt.u32.totalorder %s747_s8, %s905_s7 }
 0x2c0   :  { %p753_p1 = pnand %p751_p0, %p748_p13 }
 0x2c2   :  { %756 = shalt.err (!%p753_p1)
}
 0x2c3   :  { %559 = dma.vmem_to_hbm [thread:$0]  %s557_s28, 128, %s905_s7, [#allocation4]  }
 0x2c4   :  { %759 = dma.done.wait [#allocation4], 128  }
 0x2c5   :  { %760 = vsyncadd [#allocation4], 4294967168 }
 0x2c6   :  { %563 = vsyncpa [#allocation3], 1 }
 0x2c7   :  { %564 = vsyncpa [#allocation4], 1 }

</bundles_post_ra>
